<compile_context>
chip_gen: v7x
topology: tpu7x:2x2x1
jax: 0.10.0
libtpu: 0.0.40
codegen_flags: <defaults>
</compile_context>

<pallas_src>
import functools

import jax
import jax.numpy as jnp
from jax.experimental import pallas as pl
from jax.experimental.pallas import tpu as pltpu


def _round_up(x, m):
    return ((x + m - 1) // m) * m


def _choose_row_block(m, max_row_block):
    """~Even row blocks (multiple of 8), capped, >= 2 blocks once M >= 1024."""
    n_blocks = pl.cdiv(m, max_row_block)
    if m >= 1024:
        n_blocks = max(n_blocks, 2)   # let multi-TensorCore chips share the rows
    return min(max_row_block, _round_up(pl.cdiv(m, n_blocks), 8))


def _damm_kernel(xa_ref, xs_ref, xt_ref, wa_ref, ws_ref, wt_ref,
                 w2_ref, w3_ref, b1_ref, b2_ref, b3_ref, out_ref):
    """Fused encoders -> combine_fc -> out_fc for one row block."""
    cd = jnp.bfloat16
    f32 = jnp.float32
    # Encoders: three small MXU dots summed into a 128-lane-padded `enc`.
    # (temporal mean over T is folded into wt_ref = tile(wt, T) / T)
    enc = (jnp.dot(xa_ref[...].astype(cd), wa_ref[...], preferred_element_type=f32)
           + jnp.dot(xs_ref[...].astype(cd), ws_ref[...], preferred_element_type=f32)
           + jnp.dot(xt_ref[...].astype(cd), wt_ref[...], preferred_element_type=f32)
           + b1_ref[...])
    enc = jnp.maximum(enc, 0.0)
    # combine_fc: Linear + ReLU
    comb = jnp.maximum(
        jnp.dot(enc.astype(cd), w2_ref[...], preferred_element_type=f32) + b2_ref[...],
        0.0)
    # out_fc: Linear, lane-minimal (row_block, future_frames*2) store.
    out_ref[...] = (
        jnp.dot(comb.astype(cd), w3_ref[...], preferred_element_type=f32) + b3_ref[...])


@functools.partial(jax.jit, static_argnames=("future_frames", "max_row_block"))
def damm_variant_forward(agent_features, spatial_motif, temporal_motif, adj, params,
                         future_frames=6, max_row_block=2048):
    del adj  # unused (matches the PyTorch reference)
    B, N, Da = agent_features.shape
    Ds = spatial_motif.shape[-1]
    T, Dt = temporal_motif.shape[-2], temporal_motif.shape[-1]
    M = B * N

    (wa, ba, ws, bs, wt, bt, wca, wcs, wct, bc, wo, bo) = params
    H = wa.shape[1]
    out_dim = wo.shape[1]
    assert out_dim == future_frames * 2
    ENC = _round_up(3 * H, 128)  # encoder concat width, lane-padded (96 -> 128)

    # ---- inputs: metadata-only reshapes, no concat / pad / cast pass.
    xa = agent_features.reshape(M, Da)
    xs = spatial_motif.reshape(M, Ds)
    xt = temporal_motif.reshape(M, T * Dt)   # lane-dense (T*Dt == 128 here)

    # ---- weights: bf16, block-diagonal layout padded to ENC lanes.
    wdt = jnp.bfloat16
    wa_p = jnp.zeros((Da, ENC), wdt).at[:, 0:H].set(wa.astype(wdt))
    ws_p = jnp.zeros((Ds, ENC), wdt).at[:, H:2 * H].set(ws.astype(wdt))
    wt_p = jnp.zeros((T * Dt, ENC), wdt).at[:, 2 * H:3 * H].set(
        (jnp.tile(wt, (T, 1)) / T).astype(wdt))
    w2_p = jnp.zeros((ENC, H), wdt).at[:3 * H, :].set(
        jnp.concatenate([wca, wcs, wct], axis=0).astype(wdt))
    w3_p = wo.astype(wdt)                                      # (H, out_dim)

    b1 = jnp.zeros((1, ENC), jnp.float32).at[0, :3 * H].set(
        jnp.concatenate([ba, bs, bt], axis=1)[0].astype(jnp.float32))
    b2 = bc.astype(jnp.float32)                                # (1, H)
    b3 = bo.astype(jnp.float32)                                # (1, out_dim)

    # ---- grid: ragged last row block (<= 7 wasted rows, never written back).
    row_block = _choose_row_block(M, max_row_block)
    grid = (pl.cdiv(M, row_block),)

    row_spec = lambda w: pl.BlockSpec((row_block, w), lambda i: (i, 0))
    # Grid-invariant operands (weights/biases): fetched once, not re-DMA'd.
    const_spec = lambda a: pl.BlockSpec(a.shape, lambda i: (0,) * a.ndim)

    out_flat = pl.pallas_call(
        _damm_kernel,
        out_shape=jax.ShapeDtypeStruct((M, out_dim), jnp.float32),
        grid_spec=pltpu.PrefetchScalarGridSpec(
            num_scalar_prefetch=0,
            grid=grid,
            in_specs=[
                row_spec(Da), row_spec(Ds), row_spec(T * Dt),
                const_spec(wa_p), const_spec(ws_p), const_spec(wt_p),
                const_spec(w2_p), const_spec(w3_p),
                const_spec(b1), const_spec(b2), const_spec(b3),
            ],
            out_specs=pl.BlockSpec((row_block, out_dim), lambda i: (i, 0)),
        ),
        compiler_params=pltpu.CompilerParams(
            dimension_semantics=("parallel",),
            vmem_limit_bytes=32 * 1024 * 1024,
        ),
    )(xa, xs, xt, wa_p, ws_p, wt_p, w2_p, w3_p, b1, b2, b3)

    # (M, out_dim) is contiguous -> this reshape is metadata-only (no copy).
    return out_flat.reshape(B, N, future_frames, 2)


def init_params(key, agent_input_dim=4, motif_spatial_dim=16, motif_temporal_dim=16,
                hidden_dim=32, future_frames=6):
    """Deterministic synthetic weights (shapes match the nn.Module)."""
    keys = jax.random.split(key, 10)

    def lin(k, fan_in, fan_out):
        kw, kb = jax.random.split(k)
        lim = 1.0 / jnp.sqrt(fan_in)
        w = jax.random.uniform(kw, (fan_in, fan_out), jnp.float32, -lim, lim)
        b = jax.random.uniform(kb, (1, fan_out), jnp.float32, -lim, lim)
        return w, b

    wa, ba = lin(keys[0], agent_input_dim, hidden_dim)
    ws, bs = lin(keys[1], motif_spatial_dim, hidden_dim)
    wt, bt = lin(keys[2], motif_temporal_dim, hidden_dim)
    # combine_fc takes concat of 3 hidden vectors (use_stmm=use_asi=use_ati=True)
    wc, bc = lin(keys[3], 3 * hidden_dim, hidden_dim)
    wca, wcs, wct = wc[:hidden_dim], wc[hidden_dim:2 * hidden_dim], wc[2 * hidden_dim:]
    wo, bo = lin(keys[4], hidden_dim, future_frames * 2)
    return (wa, ba, ws, bs, wt, bt, wca, wcs, wct, bc, wo, bo)


def damm_reference(agent_features, spatial_motif, temporal_motif, params, future_frames=6):
    (wa, ba, ws, bs, wt, bt, wca, wcs, wct, bc, wo, bo) = params
    B, N, _ = agent_features.shape
    a = jnp.maximum(agent_features @ wa + ba[0], 0.0)
    s = jnp.maximum(spatial_motif @ ws + bs[0], 0.0)
    t_avg = jnp.mean(temporal_motif, axis=2)
    t = jnp.maximum(t_avg @ wt + bt[0], 0.0)
    comb = jnp.concatenate([a, s, t], axis=-1)
    wc = jnp.concatenate([wca, wcs, wct], axis=0)
    comb = jnp.maximum(comb @ wc + bc[0], 0.0)
    out = comb @ wo + bo[0]
    return out.reshape(B, N, future_frames, 2)


if __name__ == "__main__":
    B, N = 2, 8
    agent_input_dim, motif_spatial_dim, motif_temporal_dim = 4, 16, 16
    T, future_frames = 8, 6

    key = jax.random.PRNGKey(0)
    k_in, k_par = jax.random.split(key)
    k1, k2, k3, k4 = jax.random.split(k_in, 4)

    agent_features = jax.random.normal(k1, (B, N, agent_input_dim), jnp.float32)
    spatial_motif = jax.random.normal(k2, (B, N, motif_spatial_dim), jnp.float32)
    temporal_motif = jax.random.normal(k3, (B, N, T, motif_temporal_dim), jnp.float32)
    adj = jax.random.normal(k4, (B, N, N), jnp.float32)  # unused, signature parity

    params = init_params(k_par, agent_input_dim, motif_spatial_dim,
                         motif_temporal_dim, 32, future_frames)

    out = damm_variant_forward(agent_features, spatial_motif, temporal_motif, adj,
                               params, future_frames=future_frames)
    out = jax.block_until_ready(out)

    ref = damm_reference(agent_features, spatial_motif, temporal_motif, params,
                         future_frames=future_frames)
    assert out.shape == (B, N, future_frames, 2)
    # bf16 weights / in-kernel bf16 MXU path + folded temporal mean -> allow a
    # bf16-level tolerance versus the f32 reference.
    assert jnp.allclose(out, ref, atol=5e-2, rtol=5e-2)

    print("KERNEL_OK")
</pallas_src>

<mosaic_0001>
module attributes {stable_mosaic.version = 11 : i64} {
  func.func @_damm_kernel(%arg0: i32, %arg1: memref<16x4xf32, #tpu.memory_space<vmem>>, %arg2: memref<16x16xf32, #tpu.memory_space<vmem>>, %arg3: memref<16x128xf32, #tpu.memory_space<vmem>>, %arg4: memref<4x128xbf16, #tpu.memory_space<vmem>>, %arg5: memref<16x128xbf16, #tpu.memory_space<vmem>>, %arg6: memref<128x128xbf16, #tpu.memory_space<vmem>>, %arg7: memref<128x32xbf16, #tpu.memory_space<vmem>>, %arg8: memref<32x12xbf16, #tpu.memory_space<vmem>>, %arg9: memref<1x128xf32, #tpu.memory_space<vmem>>, %arg10: memref<1x32xf32, #tpu.memory_space<vmem>>, %arg11: memref<1x12xf32, #tpu.memory_space<vmem>>, %arg12: memref<16x12xf32, #tpu.memory_space<vmem>>) attributes {dimension_semantics = [#tpu.dimension_semantics<parallel>], iteration_bounds = array<i64: 1>, scalar_prefetch = 0 : i64, scratch_operands = 0 : i64, tpu.core_type = #tpu.core_type<tc>, window_params = [{transform_indices = @transform_0, window_bounds = array<i64: 16, 4>}, {transform_indices = @transform_1, window_bounds = array<i64: 16, 16>}, {transform_indices = @transform_2, window_bounds = array<i64: 16, 128>}, {pipeline_mode = #tpu.pipeline_mode<synchronous>, transform_indices = @transform_3, window_bounds = array<i64: 4, 128>}, {pipeline_mode = #tpu.pipeline_mode<synchronous>, transform_indices = @transform_4, window_bounds = array<i64: 16, 128>}, {pipeline_mode = #tpu.pipeline_mode<synchronous>, transform_indices = @transform_5, window_bounds = array<i64: 128, 128>}, {pipeline_mode = #tpu.pipeline_mode<synchronous>, transform_indices = @transform_6, window_bounds = array<i64: 128, 32>}, {pipeline_mode = #tpu.pipeline_mode<synchronous>, transform_indices = @transform_7, window_bounds = array<i64: 32, 12>}, {pipeline_mode = #tpu.pipeline_mode<synchronous>, transform_indices = @transform_8, window_bounds = array<i64: 1, 128>}, {pipeline_mode = #tpu.pipeline_mode<synchronous>, transform_indices = @transform_9, window_bounds = array<i64: 1, 32>}, {pipeline_mode = #tpu.pipeline_mode<synchronous>, transform_indices = @transform_10, window_bounds = array<i64: 1, 12>}, {transform_indices = @transform_11, window_bounds = array<i64: 16, 12>}]} {
    %c0 = arith.constant 0 : index
    %c0_0 = arith.constant 0 : index
    %0 = vector.load %arg1[%c0, %c0_0] : memref<16x4xf32, #tpu.memory_space<vmem>>, vector<16x4xf32>
    %1 = arith.truncf %0 : vector<16x4xf32> to vector<16x4xbf16>
    %c0_1 = arith.constant 0 : index
    %c0_2 = arith.constant 0 : index
    %2 = vector.load %arg4[%c0_1, %c0_2] : memref<4x128xbf16, #tpu.memory_space<vmem>>, vector<4x128xbf16>
    %cst = arith.constant dense<0.000000e+00> : vector<16x128xf32>
    %3 = tpu.matmul %1, %2, %cst {dimension_numbers = #tpu.dot_dimension_numbers<[1], [0], [0], [1], [0, 0, 1, 1], [], []>} : vector<16x4xbf16>, vector<4x128xbf16>, vector<16x128xf32> -> vector<16x128xf32>
    %c0_3 = arith.constant 0 : index
    %c0_4 = arith.constant 0 : index
    %4 = vector.load %arg2[%c0_3, %c0_4] : memref<16x16xf32, #tpu.memory_space<vmem>>, vector<16x16xf32>
    %5 = arith.truncf %4 : vector<16x16xf32> to vector<16x16xbf16>
    %c0_5 = arith.constant 0 : index
    %c0_6 = arith.constant 0 : index
    %6 = vector.load %arg5[%c0_5, %c0_6] : memref<16x128xbf16, #tpu.memory_space<vmem>>, vector<16x128xbf16>
    %cst_7 = arith.constant dense<0.000000e+00> : vector<16x128xf32>
    %7 = tpu.matmul %5, %6, %cst_7 {dimension_numbers = #tpu.dot_dimension_numbers<[1], [0], [0], [1], [0, 0, 1, 1], [], []>} : vector<16x16xbf16>, vector<16x128xbf16>, vector<16x128xf32> -> vector<16x128xf32>
    %8 = arith.addf %3, %7 : vector<16x128xf32>
    %c0_8 = arith.constant 0 : index
    %c0_9 = arith.constant 0 : index
    %9 = vector.load %arg3[%c0_8, %c0_9] : memref<16x128xf32, #tpu.memory_space<vmem>>, vector<16x128xf32>
    %10 = arith.truncf %9 : vector<16x128xf32> to vector<16x128xbf16>
    %c0_10 = arith.constant 0 : index
    %c0_11 = arith.constant 0 : index
    %11 = vector.load %arg6[%c0_10, %c0_11] : memref<128x128xbf16, #tpu.memory_space<vmem>>, vector<128x128xbf16>
    %cst_12 = arith.constant dense<0.000000e+00> : vector<16x128xf32>
    %12 = tpu.matmul %10, %11, %cst_12 {dimension_numbers = #tpu.dot_dimension_numbers<[1], [0], [0], [1], [0, 0, 1, 1], [], []>} : vector<16x128xbf16>, vector<128x128xbf16>, vector<16x128xf32> -> vector<16x128xf32>
    %13 = arith.addf %8, %12 : vector<16x128xf32>
    %c0_13 = arith.constant 0 : index
    %c0_14 = arith.constant 0 : index
    %14 = vector.load %arg9[%c0_13, %c0_14] : memref<1x128xf32, #tpu.memory_space<vmem>>, vector<1x128xf32>
    %15 = vector.broadcast %14 : vector<1x128xf32> to vector<16x128xf32>
    %16 = arith.addf %13, %15 : vector<16x128xf32>
    %cst_15 = arith.constant 0.000000e+00 : f32
    %17 = vector.broadcast %cst_15 : f32 to vector<16x128xf32>
    %18 = arith.maximumf %16, %17 : vector<16x128xf32>
    %19 = arith.truncf %18 : vector<16x128xf32> to vector<16x128xbf16>
    %c0_16 = arith.constant 0 : index
    %c0_17 = arith.constant 0 : index
    %20 = vector.load %arg7[%c0_16, %c0_17] : memref<128x32xbf16, #tpu.memory_space<vmem>>, vector<128x32xbf16>
    %cst_18 = arith.constant dense<0.000000e+00> : vector<16x32xf32>
    %21 = tpu.matmul %19, %20, %cst_18 {dimension_numbers = #tpu.dot_dimension_numbers<[1], [0], [0], [1], [0, 0, 1, 1], [], []>} : vector<16x128xbf16>, vector<128x32xbf16>, vector<16x32xf32> -> vector<16x32xf32>
    %c0_19 = arith.constant 0 : index
    %c0_20 = arith.constant 0 : index
    %22 = vector.load %arg10[%c0_19, %c0_20] : memref<1x32xf32, #tpu.memory_space<vmem>>, vector<1x32xf32>
    %23 = vector.broadcast %22 : vector<1x32xf32> to vector<16x32xf32>
    %24 = arith.addf %21, %23 : vector<16x32xf32>
    %cst_21 = arith.constant 0.000000e+00 : f32
    %25 = vector.broadcast %cst_21 : f32 to vector<16x32xf32>
    %26 = arith.maximumf %24, %25 : vector<16x32xf32>
    %27 = arith.truncf %26 : vector<16x32xf32> to vector<16x32xbf16>
    %c0_22 = arith.constant 0 : index
    %c0_23 = arith.constant 0 : index
    %28 = vector.load %arg8[%c0_22, %c0_23] : memref<32x12xbf16, #tpu.memory_space<vmem>>, vector<32x12xbf16>
    %cst_24 = arith.constant dense<0.000000e+00> : vector<16x12xf32>
    %29 = tpu.matmul %27, %28, %cst_24 {dimension_numbers = #tpu.dot_dimension_numbers<[1], [0], [0], [1], [0, 0, 1, 1], [], []>} : vector<16x32xbf16>, vector<32x12xbf16>, vector<16x12xf32> -> vector<16x12xf32>
    %c0_25 = arith.constant 0 : index
    %c0_26 = arith.constant 0 : index
    %30 = vector.load %arg11[%c0_25, %c0_26] : memref<1x12xf32, #tpu.memory_space<vmem>>, vector<1x12xf32>
    %31 = vector.broadcast %30 : vector<1x12xf32> to vector<16x12xf32>
    %32 = arith.addf %29, %31 : vector<16x12xf32>
    %c0_27 = arith.constant 0 : index
    %c0_28 = arith.constant 0 : index
    %33 = vector.load %arg12[%c0_27, %c0_28] : memref<16x12xf32, #tpu.memory_space<vmem>>, vector<16x12xf32>
    tpu.vector_store %arg12[%c0_27, %c0_28], %32 {strides = array<i32>} : memref<16x12xf32, #tpu.memory_space<vmem>>, vector<16x12xf32>,
    return
  }
  func.func @transform_0(%arg0: i32) -> (i32, i32) {
    %c0_i32 = arith.constant 0 : i32
    %c0_i32_0 = arith.constant 0 : i32
    return %arg0, %c0_i32 : i32, i32
  }
  func.func @transform_1(%arg0: i32) -> (i32, i32) {
    %c0_i32 = arith.constant 0 : i32
    %c0_i32_0 = arith.constant 0 : i32
    return %arg0, %c0_i32 : i32, i32
  }
  func.func @transform_2(%arg0: i32) -> (i32, i32) {
    %c0_i32 = arith.constant 0 : i32
    %c0_i32_0 = arith.constant 0 : i32
    return %arg0, %c0_i32 : i32, i32
  }
  func.func @transform_3(%arg0: i32) -> (i32, i32) {
    %c0_i32 = arith.constant 0 : i32
    %c0_i32_0 = arith.constant 0 : i32
    %c0_i32_1 = arith.constant 0 : i32
    return %c0_i32, %c0_i32_0 : i32, i32
  }
  func.func @transform_4(%arg0: i32) -> (i32, i32) {
    %c0_i32 = arith.constant 0 : i32
    %c0_i32_0 = arith.constant 0 : i32
    %c0_i32_1 = arith.constant 0 : i32
    return %c0_i32, %c0_i32_0 : i32, i32
  }
  func.func @transform_5(%arg0: i32) -> (i32, i32) {
    %c0_i32 = arith.constant 0 : i32
    %c0_i32_0 = arith.constant 0 : i32
    %c0_i32_1 = arith.constant 0 : i32
    return %c0_i32, %c0_i32_0 : i32, i32
  }
  func.func @transform_6(%arg0: i32) -> (i32, i32) {
    %c0_i32 = arith.constant 0 : i32
    %c0_i32_0 = arith.constant 0 : i32
    %c0_i32_1 = arith.constant 0 : i32
    return %c0_i32, %c0_i32_0 : i32, i32
  }
  func.func @transform_7(%arg0: i32) -> (i32, i32) {
    %c0_i32 = arith.constant 0 : i32
    %c0_i32_0 = arith.constant 0 : i32
    %c0_i32_1 = arith.constant 0 : i32
    return %c0_i32, %c0_i32_0 : i32, i32
  }
  func.func @transform_8(%arg0: i32) -> (i32, i32) {
    %c0_i32 = arith.constant 0 : i32
    %c0_i32_0 = arith.constant 0 : i32
    %c0_i32_1 = arith.constant 0 : i32
    return %c0_i32, %c0_i32_0 : i32, i32
  }
  func.func @transform_9(%arg0: i32) -> (i32, i32) {
    %c0_i32 = arith.constant 0 : i32
    %c0_i32_0 = arith.constant 0 : i32
    %c0_i32_1 = arith.constant 0 : i32
    return %c0_i32, %c0_i32_0 : i32, i32
  }
  func.func @transform_10(%arg0: i32) -> (i32, i32) {
    %c0_i32 = arith.constant 0 : i32
    %c0_i32_0 = arith.constant 0 : i32
    %c0_i32_1 = arith.constant 0 : i32
    return %c0_i32, %c0_i32_0 : i32, i32
  }
  func.func @transform_11(%arg0: i32) -> (i32, i32) {
    %c0_i32 = arith.constant 0 : i32
    %c0_i32_0 = arith.constant 0 : i32
    return %arg0, %c0_i32 : i32, i32
  }
}

</mosaic_0001>

<bundles_post_ra>
// kernel: damm_variant_forward.1
= control target key start
LH: loop header
LB: loop body
LE: loop exit
PB: predicated region body
PF: predicated region fallthrough
CT: control target
= control target key end

     0   :  { %vm103_vm0 = vcmask 1041408   ;;  %v591_v0 = vmov 0.0   ;;  %vm592_vm1 = vmmov 0   ;;  %vm54_vm2 = vcmask 130048   ;;  %s776_s4 = inlined_call_operand.vmem [shape: bf16[16,128], index: 4, kind: input, shape index: {}]   ;;  %s777_s3 = inlined_call_operand.vmem [shape: bf16[4,128], index: 3, kind: input, shape index: {}]   ;;  %s778_s1 = inlined_call_operand.vmem [shape: f32[16,16], index: 1, kind: input, shape index: {}]   ;;  %s779_s0 = inlined_call_operand.vmem [shape: f32[16,4], index: 0, kind: input, shape index: {}]   ;;  %s780_s5 = inlined_call_operand.vmem [shape: bf16[128,128], index: 5, kind: input, shape index: {}]   ;;  %s781_s2 = inlined_call_operand.vmem [shape: f32[16,128], index: 2, kind: input, shape index: {}]   ;;  %s782_s6 = inlined_call_operand.vmem [shape: bf16[128,32], index: 6, kind: input, shape index: {}]   ;;  %s783_s8 = inlined_call_operand.vmem [shape: f32[1,128], index: 8, kind: input, shape index: {}]   ;;  %s784_s7 = inlined_call_operand.vmem [shape: bf16[32,12], index: 7, kind: input, shape index: {}]   ;;  %s785_s9 = inlined_call_operand.vmem [shape: f32[1,32], index: 9, kind: input, shape index: {}]   ;;  %s786_s10 = inlined_call_operand.vmem [shape: f32[1,12], index: 10, kind: input, shape index: {}]   ;;  %s787_s11 = inlined_call_operand.vmem [shape: f32[16,12], index: 11, kind: output, shape index: {}]  }
   0x1   :  { %510 = vmatprep.subr.bf16.mxu0 %v591_v0  ;;  %516 = vmatprep.subr.bf16.mxu1 %v591_v0  ;;  %v572_v1 = vld [vmem:[%s776_s4] sm:$0xff]   ;;  %v44_v4 = vld [vmem:[%s778_s1 + $0x8] sm:$0xff]  ;;  %vm99_vm3 = vcmask 31744   ;;  %v575_v12 = vld [vmem:[%s780_s5 + $0x10] sm:$0xff]   ;;  %vm408_vm4 = vcmask 261120   ;;  %vm453_vm5 = vcmask 97280  }
   0x2   :  { %v42_v2 = vld [vmem:[%s777_s3] sm:$0x3]  ;;  %512 = vmatprep.mubr.msk.bf16.mxu0 %vm592_vm1, %v591_v0  ;;  %518 = vmatprep.mubr.msk.bf16.mxu1 %vm592_vm1, %v591_v0  ;;  %v40_v8 = vld [vmem:[%s779_s0 + $0x8] sm:$0xff]  ;;  %v576_v13 = vld [vmem:[%s780_s5 + $0x18] sm:$0xff]  }
   0x3   :  { %v43_v3 = vld [vmem:[%s778_s1] sm:$0xff]  ;;  %511 = vmatpush3.bf16.msra.mxu0 %v572_v1  ;;  %v105_v5 = vsel %vm103_vm0, %v42_v2, 0  ;;  %v574_v11 = vld [vmem:[%s780_s5 + $0x8] sm:$0xff]   ;;  %v579_v16 = vld [vmem:[%s780_s5 + $0x30] sm:$0xff]  }
   0x4   :  { %v45_v6 = vpack.c.bf16 %v44_v4, %v43_v3  ;;  %v39_v7 = vld [vmem:[%s779_s0] sm:$0xff]  ;;  %517 = vmatpush3.bf16.msra.mxu1 %v105_v5  ;;  %522 = vmatprep.subr.bf16.mxu0 %v591_v0  ;;  %v578_v15 = vld [vmem:[%s780_s5 + $0x28] sm:$0xff]   ;;  %v580_v17 = vld [vmem:[%s780_s5 + $0x38] sm:$0xff]  }
   0x5   :  { %v41_v9 = vpack.c.bf16 %v40_v8, %v39_v7  ;;  %v573_v10 = vld [vmem:[%s780_s5] sm:$0xff]   ;;  %542 = vmatprep.subr.bf16.mxu1 %v591_v0  ;;  %v149_v19 = vld [vmem:[%s781_s2 + $0x8] sm:$0xff]  ;;  %v583_v23 = vld [vmem:[%s782_s6 + $0x10] sm:$0xff]  }
   0x6   :  { %513 = vmatmul.mubr.msk.bf16.vlgmr.msra.gmra.mrb[0].mxu0 %vm54_vm2, %v45_v6  ;;  %v577_v14 = vld [vmem:[%s780_s5 + $0x20] sm:$0xff]   ;;  %v582_v22 = vld [vmem:[%s782_s6 + $0x8] sm:$0xff]   ;;  %v584_v24 = vld [vmem:[%s782_s6 + $0x18] sm:$0xff]  }
   0x7   :  { %519 = vmatmul.mubr.msk.bf16.vlgmr.msra.gmra.mrb[0].mxu1 %vm99_vm3, %v41_v9  ;;  %523 = vmatpush3.bf16.msra.mxu0 %v573_v10  ;;  %v148_v18 = vld [vmem:[%s781_s2] sm:$0xff]  ;;  %v586_v26 = vld [vmem:[%s782_s6 + $0x28] sm:$0xff]   ;;  %v587_v27 = vld [vmem:[%s782_s6 + $0x30] sm:$0xff]  }
   0x8   :  { %524 = vmatprep.subr.bf16.mxu0 %v591_v0  ;;  %538 = vmatprep.mubr.msk.bf16.mxu0 %vm592_vm1, %v591_v0  ;;  %v150_v20 = vpack.c.bf16 %v149_v19, %v148_v18  ;;  %v581_v21 = vld [vmem:[%s782_s6] sm:$0xff]   ;;  %v588_v28 = vld [vmem:[%s782_s6 + $0x38] sm:$0xff]   ;;  %v590_v52 = vld [vmem:[%s784_s7 + $0x8] sm:$0xff]  }
   0x9   :  { %558 = vmatprep.mubr.msk.bf16.mxu1 %vm592_vm1, %v591_v0  ;;  %543 = vmatpush3.bf16.msra.mxu1 %v581_v21  ;;  %v585_v25 = vld [vmem:[%s782_s6 + $0x20] sm:$0xff]  }
   0xa   :  { %544 = vmatprep.subr.bf16.mxu1 %v591_v0  ;;  %v471_v40 = vld [vmem:[%s783_s8] ss:$0 sm:$0xff] }
   0xb   :  { %525 = vmatpush3.bf16.msra.mxu0 %v574_v11  ;;  %v589_v51 = vld [vmem:[%s784_s7] sm:$0xff]  }
   0xc   :  { %526 = vmatprep.subr.bf16.mxu0 %v591_v0  ;;  %v472_v53 = vld [vmem:[%s785_s9] ss:$0 sm:$0xff] }
   0xd   :  { %545 = vmatpush3.bf16.msra.mxu1 %v582_v22  ;;  %v481_v63 = vld [vmem:[%s786_s10] ss:$0 sm:$0xff] }
   0xe   :  { %546 = vmatprep.subr.bf16.mxu1 %v591_v0 }
   0xf   :  { %527 = vmatpush3.bf16.msra.mxu0 %v575_v12 }
  0x10   :  { %528 = vmatprep.subr.bf16.mxu0 %v591_v0 }
  0x11   :  { %547 = vmatpush3.bf16.msra.mxu1 %v583_v23 }
  0x12   :  { %548 = vmatprep.subr.bf16.mxu1 %v591_v0 }
  0x13   :  { %529 = vmatpush3.bf16.msra.mxu0 %v576_v13 }
  0x14   :  { %530 = vmatprep.subr.bf16.mxu0 %v591_v0 }
  0x15   :  { %549 = vmatpush3.bf16.msra.mxu1 %v584_v24 }
  0x16   :  { %550 = vmatprep.subr.bf16.mxu1 %v591_v0 }
  0x17   :  { %531 = vmatpush3.bf16.msra.mxu0 %v577_v14 }
  0x18   :  { %532 = vmatprep.subr.bf16.mxu0 %v591_v0 }
  0x19   :  { %551 = vmatpush3.bf16.msra.mxu1 %v585_v25 }
  0x1a   :  { %552 = vmatprep.subr.bf16.mxu1 %v591_v0 }
  0x1b   :  { %533 = vmatpush3.bf16.msra.mxu0 %v578_v15 }
  0x1c   :  { %534 = vmatprep.subr.bf16.mxu0 %v591_v0 }
  0x1d   :  { %553 = vmatpush3.bf16.msra.mxu1 %v586_v26 }
  0x1e   :  { %554 = vmatprep.subr.bf16.mxu1 %v591_v0 }
  0x1f   :  { %535 = vmatpush3.bf16.msra.mxu0 %v579_v16 }
  0x20   :  { %536 = vmatprep.subr.bf16.mxu0 %v591_v0 }
  0x21   :  { %555 = vmatpush3.bf16.msra.mxu1 %v587_v27 }
  0x22   :  { %556 = vmatprep.subr.bf16.mxu1 %v591_v0 }
  0x23   :  { %537 = vmatpush3.bf16.msra.mxu0 %v580_v17 }
  0x24   :  { %562 = vmatprep.subr.bf16.mxu0 %v591_v0 }
  0x25   :  { %557 = vmatpush3.bf16.msra.mxu1 %v588_v28 }
  0x26   :  { %539 = vmatmul.mubr.bf16.vlgmr.msra.gmra.mrb[4].mxu0 %v150_v20 }
  0x27   :  { %566 = vmatprep.mubr.msk.bf16.mxu0 %vm592_vm1, %v591_v0  ;;  %563 = vmatpush3.bf16.msra.mxu0 %v589_v51 }
  0x28   :  { %564 = vmatprep.subr.bf16.mxu0 %v591_v0 }
  0x2b   :  { %565 = vmatpush3.bf16.msra.mxu0 %v590_v52 }
  0xd9   :  { %v92_v29 = vpop.f32.mrb[0].mxu0 }
  0xda   :  { %v141_v30 = vpop.f32.mrb[0].mxu1  ;;  %v514_v31 = vpop.f32.mrb[1].mxu0 }
  0xdb   :  { %v142_v32 = vadd.f32 %v141_v30, %v92_v29  ;;  %v520_v33 = vpop.f32.mrb[1].mxu1  ;;  %v95_v34 = vpop.f32.mrb[2].mxu0 }
  0xdc   :  { %v144_v35 = vpop.f32.mrb[2].mxu1  ;;  %v515_v36 = vpop.f32.mrb[3].mxu0 }
  0xdd   :  { %v145_v37 = vadd.f32 %v144_v35, %v95_v34  ;;  %v521_v38 = vpop.f32.mrb[3].mxu1 }
  0xf9   :  { %v249_v39 = vpop.f32.mrb[4].mxu0 }
  0xfa   :  { %v256_v41 = vadd.f32 %v249_v39, %v142_v32  ;;  %v540_v42 = vpop.f32.mrb[5].mxu0 }
  0xfb   :  { %v252_v43 = vpop.f32.mrb[6].mxu0 }
  0xfc   :  { %v265_v44 = vadd.f32 %v471_v40, %v256_v41  ;;  %v257_v45 = vadd.f32 %v252_v43, %v145_v37  ;;  %v541_v46 = vpop.f32.mrb[7].mxu0 }
  0xfe   :  { %v266_v47 = vadd.f32 %v471_v40, %v257_v45  ;;  %v267_v48 = vmax.f32 %v265_v44, 0.0 }
 0x100   :  { %v268_v49 = vmax.f32 %v266_v47, 0.0 }
 0x102   :  { %v269_v50 = vpack.c.bf16 %v268_v49, %v267_v48 }
 0x104   :  { %559 = vmatmul.mubr.bf16.vlgmr.msra.gmra.mrb[4].mxu1 %v269_v50 }
 0x1d7   :  { %v375_v54 = vpop.f32.mrb[4].mxu1 }
 0x1d8   :  { %v376_v55 = vadd.f32 %v472_v53, %v375_v54  ;;  %v560_v56 = vpop.f32.mrb[5].mxu1 }
 0x1d9   :  { %v378_v57 = vpop.f32.mrb[6].mxu1 }
 0x1da   :  { %v379_v58 = vadd.f32 %v472_v53, %v378_v57  ;;  %v561_v59 = vpop.f32.mrb[7].mxu1  ;;  %v382_v60 = vmax.f32 %v376_v55, 0.0 }
 0x1dc   :  { %v383_v61 = vmax.f32 %v379_v58, 0.0 }
 0x1de   :  { %v384_v62 = vpack.c.bf16 %v383_v61, %v382_v60 }
 0x1e0   :  { %567 = vmatmul.mubr.msk.bf16.vlgmr.msra.gmra.mrb[8].mxu0 %vm408_vm4, %v384_v62 }
 0x2b3   :  { %v446_v0 = vpop.f32.mrb[8].mxu0 }
 0x2b4   :  { %v447_v1 = vadd.f32 %v481_v63, %v446_v0  ;;  %v568_v2 = vpop.f32.mrb[9].mxu0 }
 0x2b5   :  { %v449_v3 = vpop.f32.mrb[10].mxu0 }
 0x2b6   :  { %454 = vst.msk [vmem:[%s787_s11] sm:$0xff] %vm453_vm5, %v447_v1  ;;  %v450_v4 = vadd.f32 %v481_v63, %v449_v3  ;;  %v569_v5 = vpop.f32.mrb[11].mxu0 }
 0x2b8   :  { %455 = vst.msk [vmem:[%s787_s11 + $0x8] sm:$0xff] %vm453_vm5, %v450_v4 }

</bundles_post_ra>
